<compile_context>
chip_gen: v6e
topology: v6e:2x2x1
jax: 0.10.0
libtpu: 0.0.40
codegen_flags: <defaults>
</compile_context>

<pallas_src>
from typing import NamedTuple

import jax
import jax.numpy as jnp
from jax.experimental import pallas as pl
from jax.experimental.pallas import tpu as pltpu


# ---------------------------------------------------------------------------
# Kernel
# ---------------------------------------------------------------------------
def router_kernel(hs_ref, emb_ref, sim_ref):
    """One N-tile of sim = hs_scaled @ emb_norm^T.

    hs_ref  : VMEM [B, H]       bf16  hidden_state * rsqrt(||hs||^2) / t  (resident)
    emb_ref : VMEM [H, N_TILE]  bf16  L2-row-normalized embeddings, pre-transposed
    sim_ref : VMEM [B, N_TILE]  f32   cosine similarity / t
    """
    # Canonical [M,K] x [K,N] MXU contraction; f32 accumulation.
    sim_ref[...] = jax.lax.dot_general(
        hs_ref[...], emb_ref[...],
        dimension_numbers=(((1,), (0,)), ((), ())),
        preferred_element_type=jnp.float32,
    )


# ---------------------------------------------------------------------------
# One-time embedding-table preprocessing (cache the result across calls)
# ---------------------------------------------------------------------------
class RouterTable(NamedTuple):
    emb_t: jax.Array   # [H, N_pad] bf16, L2-row-normalized, transposed, zero-padded
    n_tile: int        # lane tile size along N_pad (multiple of 128, divides N_pad)
    n_nodes: int       # original (unpadded) node count N


def _round_up(x, m):
    return ((x + m - 1) // m) * m


def _choose_n_tile(n_nodes, hidden_dim, emb_bytes=2, budget_bytes=24 << 20):
    """Pick the N tile from an explicit VMEM budget for the double-buffered
    embedding stream (conservative w.r.t. v7x's 64 MiB physical / 32 MiB scoped
    per-TC VMEM; v5e/v6e have more headroom)."""
    n_pad128 = _round_up(max(n_nodes, 1), 128)
    # Whole (double-buffered) table fits -> single tile, no streaming grid.
    if 2 * n_pad128 * hidden_dim * emb_bytes <= budget_bytes:
        return n_pad128
    tile = (budget_bytes // (2 * hidden_dim * emb_bytes)) // 128 * 128
    return int(max(128, min(tile, 2048)))


def preprocess_router_embeddings(emb_weight):
    """One-time transform of the fixed nn.Embedding weight.

    L2-normalizes rows, casts to bf16, transposes to the MXU-native [H, N]
    layout and zero-pads N up to a multiple of the chosen lane tile.  Cache the
    returned RouterTable and reuse it for every forward call.
    """
    n_nodes, hidden_dim = emb_weight.shape
    n_tile = _choose_n_tile(n_nodes, hidden_dim)
    n_pad = _round_up(n_nodes, n_tile)

    emb_f32 = emb_weight.astype(jnp.float32)
    inv_norm = jax.lax.rsqrt(jnp.sum(emb_f32 * emb_f32, axis=1, keepdims=True))
    emb_norm = (emb_f32 * inv_norm).astype(jnp.bfloat16)            # [N, H] bf16

    emb_t = jnp.zeros((hidden_dim, n_pad), dtype=jnp.bfloat16)
    emb_t = emb_t.at[:, :n_nodes].set(emb_norm.T)                   # [H, N_pad]
    return RouterTable(emb_t=emb_t, n_tile=n_tile, n_nodes=n_nodes)


# ---------------------------------------------------------------------------
# Per-call forward
# ---------------------------------------------------------------------------
def router_forward(last_hidden_state, table: RouterTable, t=1.0):
    """RouterModule.forward (minus the external backbone).

    last_hidden_state: [B, S, H] float32 (backbone output)
    table:             cached RouterTable from preprocess_router_embeddings
    Returns (sim [B, N], hidden_state [B, H]).
    """
    hidden_state = last_hidden_state[:, 0, :]                       # [B, H] f32
    B, H = hidden_state.shape
    H_t, N_pad = table.emb_t.shape
    assert H == H_t, f"hidden dim mismatch: {H} vs {H_t}"
    n_tile = table.n_tile
    num_tiles = N_pad // n_tile

    # Fold the hidden-state L2 norm and the temperature into one per-row scale
    # (done once per call, NOT once per N-tile).  hidden_state is returned
    # unscaled.  Zero-norm rows -> inf/NaN, matching the reference's div-by-0.
    hs_sq = jnp.sum(hidden_state * hidden_state, axis=1, keepdims=True)
    scale = jax.lax.rsqrt(hs_sq) * (1.0 / t)                        # [B, 1]
    hs_scaled = (hidden_state * scale).astype(jnp.bfloat16)         # [B, H] bf16

    # Explicit VMEM limit derived from the actual buffer sizes (double-buffered
    # emb + hs + output), with headroom; kept under v7x's 64 MiB physical VMEM.
    need = (2 * n_tile * H * 2          # emb tiles (bf16, double-buffered)
            + 2 * B * H * 2             # hidden-state block (bf16)
            + 2 * B * n_tile * 4        # output tiles (f32)
            + (4 << 20))                # headroom / internal scratch
    vmem_limit = int(min(max(need, 16 << 20), 48 << 20))

    # NOTE: if xprof shows exposed DMA at tile boundaries for very large N,
    # pipeline_mode=pl.Buffered(3) on the emb BlockSpec is the next lever.
    sim_pad = pl.pallas_call(
        router_kernel,
        out_shape=jax.ShapeDtypeStruct((B, N_pad), jnp.float32),
        grid=(num_tiles,),
        in_specs=[
            pl.BlockSpec((B, H), lambda j: (0, 0)),                 # hs (resident)
            pl.BlockSpec((H, n_tile), lambda j: (0, j)),            # emb tile [K,N]
        ],
        out_specs=pl.BlockSpec((B, n_tile), lambda j: (0, j)),      # lane-dense out
        compiler_params=pltpu.CompilerParams(
            dimension_semantics=("parallel",),
            vmem_limit_bytes=vmem_limit,
        ),
    )(hs_scaled, table.emb_t)

    return sim_pad[:, :table.n_nodes], hidden_state


# ---------------------------------------------------------------------------
# Pure-JAX reference (matches the PyTorch semantics, full f32)
# ---------------------------------------------------------------------------
def router_forward_ref(last_hidden_state, emb_weight, t=1.0):
    hs = last_hidden_state[:, 0, :]
    dots = hs @ emb_weight.T
    denom = (jnp.linalg.norm(hs, axis=1, keepdims=True)
             * jnp.linalg.norm(emb_weight, axis=1, keepdims=True).T)
    return dots / denom / t, hs


if __name__ == "__main__":
    # Small shapes consistent with the module: batch=2, seq=8, hidden=128, nodes=3.
    B, S, H, N = 2, 8, 128, 3
    t = 2.0

    key = jax.random.PRNGKey(0)
    k_x, k_e = jax.random.split(key)

    # Synthetic backbone output and embedding init (normal, std=0.78, like the module).
    last_hidden_state = jax.random.normal(k_x, (B, S, H), dtype=jnp.float32)
    emb_weight = 0.78 * jax.random.normal(k_e, (N, H), dtype=jnp.float32)

    # One-time (cacheable) preprocessing of the fixed weight.
    table = preprocess_router_embeddings(emb_weight)
    table = jax.tree_util.tree_map(
        lambda x: jax.block_until_ready(x) if isinstance(x, jax.Array) else x, table)

    sim, hidden = router_forward(last_hidden_state, table, t)
    jax.block_until_ready((sim, hidden))

    sim_ref, hidden_ref = router_forward_ref(last_hidden_state, emb_weight, t)
    assert sim.shape == (B, N) and hidden.shape == (B, H)
    # Table is streamed in bf16 (accumulation stays f32) -> relaxed tolerance
    # vs. the all-f32 reference; fine for argmax routing.
    assert jnp.allclose(sim, sim_ref, atol=1e-2, rtol=1e-2), (sim, sim_ref)
    assert jnp.allclose(hidden, hidden_ref, atol=1e-6, rtol=1e-6)

    print("KERNEL_OK")
</pallas_src>

<mosaic_0001>
module attributes {stable_mosaic.version = 11 : i64} {
  func.func @router_kernel(%arg0: i32, %arg1: memref<2x128xbf16, #tpu.memory_space<vmem>>, %arg2: memref<128x128xbf16, #tpu.memory_space<vmem>>, %arg3: memref<2x128xf32, #tpu.memory_space<vmem>>) attributes {dimension_semantics = [#tpu.dimension_semantics<parallel>], iteration_bounds = array<i64: 1>, scalar_prefetch = 0 : i64, scratch_operands = 0 : i64, tpu.core_type = #tpu.core_type<tc>, window_params = [{pipeline_mode = #tpu.pipeline_mode<synchronous>, transform_indices = @transform_0, window_bounds = array<i64: 2, 128>}, {transform_indices = @transform_1, window_bounds = array<i64: 128, 128>}, {transform_indices = @transform_2, window_bounds = array<i64: 2, 128>}]} {
    %c0 = arith.constant 0 : index
    %c0_0 = arith.constant 0 : index
    %0 = vector.load %arg1[%c0, %c0_0] : memref<2x128xbf16, #tpu.memory_space<vmem>>, vector<2x128xbf16>
    %c0_1 = arith.constant 0 : index
    %c0_2 = arith.constant 0 : index
    %1 = vector.load %arg2[%c0_1, %c0_2] : memref<128x128xbf16, #tpu.memory_space<vmem>>, vector<128x128xbf16>
    %cst = arith.constant dense<0.000000e+00> : vector<2x128xf32>
    %2 = tpu.matmul %0, %1, %cst {dimension_numbers = #tpu.dot_dimension_numbers<[1], [0], [0], [1], [0, 0, 1, 1], [], []>} : vector<2x128xbf16>, vector<128x128xbf16>, vector<2x128xf32> -> vector<2x128xf32>
    %c0_3 = arith.constant 0 : index
    %c0_4 = arith.constant 0 : index
    %3 = vector.load %arg3[%c0_3, %c0_4] : memref<2x128xf32, #tpu.memory_space<vmem>>, vector<2x128xf32>
    tpu.vector_store %arg3[%c0_3, %c0_4], %2 {strides = array<i32>} : memref<2x128xf32, #tpu.memory_space<vmem>>, vector<2x128xf32>,
    return
  }
  func.func @transform_0(%arg0: i32) -> (i32, i32) {
    %c0_i32 = arith.constant 0 : i32
    %c0_i32_0 = arith.constant 0 : i32
    %c0_i32_1 = arith.constant 0 : i32
    return %c0_i32, %c0_i32_0 : i32, i32
  }
  func.func @transform_1(%arg0: i32) -> (i32, i32) {
    %c0_i32 = arith.constant 0 : i32
    %c0_i32_0 = arith.constant 0 : i32
    return %c0_i32, %arg0 : i32, i32
  }
  func.func @transform_2(%arg0: i32) -> (i32, i32) {
    %c0_i32 = arith.constant 0 : i32
    %c0_i32_0 = arith.constant 0 : i32
    return %c0_i32, %arg0 : i32, i32
  }
}

</mosaic_0001>

<bundles_post_ra>
// kernel: tpu_custom_call.1
= control target key start
LH: loop header
LB: loop body
LE: loop exit
PB: predicated region body
PF: predicated region fallthrough
CT: control target
= control target key end

     0   :  { %7 = vsyncpa [#allocation3], 0  ;;  %s310_s0 = inlined_call_operand.hbm [shape: bf16[2,128], index: 0, kind: input, shape index: {}]   ;;  %s311_s1 = inlined_call_operand.hbm [shape: bf16[128,128], index: 1, kind: input, shape index: {}]   ;;  %s312_s2 = inlined_call_operand.hbm [shape: f32[2,128], index: 2, kind: output, shape index: {}]  }
   0x1   :  { %8 = vsyncpa [#allocation6], 0 }
   0x2   :  { %9 = vsyncpa [#allocation4], 0  ;;  %s279_s9 = smov [#allocation2]   ;;  %s280_s11 = smov [#allocation5]  }
   0x3   :  { %s16_s10 = sshll.u32 %s279_s9, 4  ;;  %s25_s12 = sshll.u32 %s280_s11, 4  ;;  %s17_s10 = int_to_ptr.vmem [resolvable:$true] %s16_s10  ;;  %s26_s12 = int_to_ptr.vmem [resolvable:$true] %s25_s12 }
   0x4   :  { %s221_s13 = scalar_lea.vmem %s17_s10, 16  ;;  %s225_s14 = scalar_lea.vmem %s17_s10, 32 }
   0x5   :  { %p222_p0 = scmp.ne.s32.totalorder %s17_s10, %s221_s13  ;;  %p226_p1 = scmp.lt.s32.totalorder %s17_s10, %s17_s10 }
   0x6   :  { %p227_p2 = scmp.lt.s32.totalorder %s225_s14, %s221_s13 }
   0x8   :  { %p228_p3 = por %p227_p2, %p226_p1 }
   0xa   :  { %p229_p4 = pnand %p228_p3, %p222_p0 }
   0xc   :  { %232 = shalt.err (!%p229_p4)
}
   0xd   :  { %19 = dma.hbm_to_vmem [thread:$0]  %s310_s0, 16, %s17_s10, [#allocation3]  }
   0xe   :  { %s241_s17 = scalar_lea.vmem %s26_s12, 1024  ;;  %p246_p6 = scmp.lt.s32.totalorder %s26_s12, %s26_s12 }
   0xf   :  { %p242_p5 = scmp.ne.s32.totalorder %s26_s12, %s241_s17  ;;  %p247_p7 = scmp.lt.s32.totalorder %s241_s17, %s241_s17 }
  0x11   :  { %p248_p8 = por %p247_p7, %p246_p6 }
  0x13   :  { %p249_p9 = pnand %p248_p8, %p242_p5 }
  0x15   :  { %252 = shalt.err (!%p249_p9)
}
  0x16   :  { %s281_s18 = smov 64   ;;  %s282_s19 = smov 4  }
  0x17   :  { %31 = dma.hbm_to_vmem [thread:$0]  %s311_s1, 1024, %s26_s12, [#allocation6], %s281_s18, %s281_s18, %s282_s19  }
  0x18   :  { %273 = dma.done.wait [#allocation3], 16  }
  0x19   :  { %274 = vsyncadd [#allocation3], 4294967280 }
  0x1a   :  { %275 = dma.done.wait [#allocation6], 1024  }
  0x1b   :  { %276 = vsyncadd [#allocation6], 4294966272  ;;  %v283_v0 = vmov 0.0   ;;  %vm284_vm0 = vmmov 0   ;;  %v205_v1 = vld [vmem:[#allocation5 + $0x38] sm:$0xff]   ;;  %v206_v2 = vld [vmem:[#allocation5 + $0x30] sm:$0xff]  }
  0x1c   :  { %178 = vmatprep.subr.bf16.mxu0 %v283_v0  ;;  %194 = vmatprep.mubr.msk.bf16.mxu0 %vm284_vm0, %v283_v0  ;;  %v207_v3 = vld [vmem:[#allocation5 + $0x28] sm:$0xff]   ;;  %v208_v4 = vld [vmem:[#allocation5 + $0x20] sm:$0xff]   ;;  %v209_v5 = vld [vmem:[#allocation5 + $0x18] sm:$0xff]   ;;  %s285_s0 = smov [#allocation7]  }
  0x1d   :  { %179 = vmatpush3.bf16.msra.mxu0 %v205_v1  ;;  %v210_v6 = vld [vmem:[#allocation5 + $0x10] sm:$0xff]   ;;  %v211_v7 = vld [vmem:[#allocation5 + $0x8] sm:$0xff]   ;;  %v212_v8 = vld [vmem:[#allocation5] sm:$0xff]   ;;  %s151_s1 = sshll.u32 %s285_s0, 4  ;;  %s152_s1 = int_to_ptr.vmem [resolvable:$true] %s151_s1 }
  0x1e   :  { %180 = vmatprep.subr.bf16.mxu0 %v283_v0  ;;  %v39_v9 = vld [vmem:[#allocation2] sm:$0x1]  ;;  %s253_s22 = scalar_lea.vmem %s152_s1, 32  ;;  %p258_p11 = scmp.lt.s32.totalorder %s152_s1, %s152_s1 }
  0x1f   :  { %p254_p10 = scmp.ne.s32.totalorder %s152_s1, %s253_s22  ;;  %p259_p12 = scmp.lt.s32.totalorder %s253_s22, %s253_s22 }
  0x21   :  { %181 = vmatpush3.bf16.msra.mxu0 %v206_v2  ;;  %p260_p13 = por %p259_p12, %p258_p11 }
  0x22   :  { %182 = vmatprep.subr.bf16.mxu0 %v283_v0 }
  0x23   :  { %p261_p0 = pnand %p260_p13, %p254_p10 }
  0x25   :  { %183 = vmatpush3.bf16.msra.mxu0 %v207_v3 }
  0x26   :  { %184 = vmatprep.subr.bf16.mxu0 %v283_v0 }
  0x29   :  { %185 = vmatpush3.bf16.msra.mxu0 %v208_v4 }
  0x2a   :  { %186 = vmatprep.subr.bf16.mxu0 %v283_v0 }
  0x2d   :  { %187 = vmatpush3.bf16.msra.mxu0 %v209_v5 }
  0x2e   :  { %188 = vmatprep.subr.bf16.mxu0 %v283_v0 }
  0x31   :  { %189 = vmatpush3.bf16.msra.mxu0 %v210_v6 }
  0x32   :  { %190 = vmatprep.subr.bf16.mxu0 %v283_v0 }
  0x35   :  { %191 = vmatpush3.bf16.msra.mxu0 %v211_v7 }
  0x36   :  { %192 = vmatprep.subr.bf16.mxu0 %v283_v0 }
  0x39   :  { %193 = vmatpush3.bf16.msra.mxu0 %v212_v8 }
  0x3c   :  { %195 = vmatmul.mubr.bf16.vlgmr.msra.gmra.mxu0 %v39_v9 }
  0xfc   :  { %v138_v10 = vpop.f32.mrf.mxu0 }
  0xfd   :  { %144 = vst [vmem:[#allocation7] sm:$0x3] %v138_v10 }
  0xfe   :  { %v196_v11 = vpop.f32.mrf.mxu0 }
  0xff   :  { %264 = shalt.err (!%p261_p0)
}
 0x100   :  { %154 = dma.vmem_to_hbm [thread:$0]  %s152_s1, 32, %s312_s2, [#allocation4]   ;;  %v141_v12 = vpop.f32.mrf.mxu0 }
 0x102   :  { %v197_v13 = vpop.f32.mrf.mxu0 }
 0x103   :  { %277 = dma.done.wait [#allocation4], 32  }
 0x104   :  { %278 = vsyncadd [#allocation4], 4294967264 }
 0x105   :  { %158 = vsyncpa [#allocation3], 1 }
 0x106   :  { %159 = vsyncpa [#allocation6], 1 }
 0x107   :  { %160 = vsyncpa [#allocation4], 1 }

</bundles_post_ra>
